<compile_context>
chip_gen: v6e
topology: v6e:2x2x1
jax: 0.10.0
libtpu: 0.0.40
codegen_flags: <defaults>
</compile_context>

<pallas_src>
import math

import jax
import jax.numpy as jnp
from jax import lax
from jax.experimental import pallas as pl
from jax.experimental.pallas import tpu as pltpu


_NEG_BIG = -1e30          # finite "-inf": exp() underflows to exactly 0.0, no NaNs
_VMEM_BUDGET = 20 << 20   # per-grid-step working-set target (conservative for v7x's
                          # 64 MiB physical VMEM; v5e/v6e have 128 MiB)
_VMEM_FLOOR = 32 << 20    # explicit scoped-VMEM limit floor (defaults are 16/32/32 MiB)
_VMEM_CAP = 100 << 20


def _mosaic_params(dimension_semantics, working_bytes):
    """CompilerParams with an explicit scoped-VMEM limit derived from block sizes."""
    limit = int(min(max(int(working_bytes * 1.5), _VMEM_FLOOR), _VMEM_CAP))
    return pltpu.CompilerParams(
        dimension_semantics=dimension_semantics, vmem_limit_bytes=limit)


def _tile(dim, target, align):
    """Largest divisor of `dim` that is a multiple of `align` and <= target,
    falling back to the full dimension (full-extent blocks are always legal)."""
    if dim <= target:
        return dim
    t = (min(target, dim) // align) * align
    while t >= align:
        if dim % t == 0:
            return t
        t -= align
    return dim


def _pick_heads_per_block(n_head, per_head_bytes, budget_bytes, parallel_steps):
    """Heads per attention grid step, budgeted by VMEM.  The head axis is the
    second-minor dim of the fused-qkv blocks, so hb must be a multiple of 8 or
    the full n_head (layout (8,128) rule)."""
    cands = [d for d in range(1, n_head + 1)
             if n_head % d == 0 and (d % 8 == 0 or d == n_head)]
    fit = [d for d in cands if d * per_head_bytes <= budget_bytes] or [min(cands)]
    hb = max(fit)
    # v7x has 2 TensorCores: keep >= 2 parallel grid steps when a smaller block allows.
    if parallel_steps * (n_head // hb) < 2:
        smaller = [d for d in fit if n_head // d >= 2]
        if smaller:
            hb = max(smaller)
    return hb


# ---------------------------------------------------------------------------
# Linear projection: (M, K) @ (K, N) + (N,), tiled over (M, N, K) with a
# resident f32 VMEM accumulator over the K axis.
# ---------------------------------------------------------------------------
def _linear_kernel(x_ref, w_ref, b_ref, o_ref, acc_ref):
    @pl.when(pl.program_id(2) == 0)
    def _():
        acc_ref[...] = jnp.zeros_like(acc_ref)

    acc_ref[...] += jnp.dot(x_ref[...], w_ref[...],
                            preferred_element_type=jnp.float32)

    @pl.when(pl.program_id(2) == pl.num_programs(2) - 1)
    def _():
        o_ref[...] = (acc_ref[...] + b_ref[...]).astype(o_ref.dtype)


def linear(x2d, w, b, *, tm_target=512, tn_target=256, tk_target=512):
    M, K = x2d.shape
    K2, N = w.shape
    assert K == K2
    tm = _tile(M, tm_target, 8)      # sublane-aligned row tile
    tn = _tile(N, tn_target, 128)    # lane-dense column tile (unmasked stores)
    tk = _tile(K, tk_target, 128)    # K blocks keep DMA tiles small on v7x
    b2d = b.reshape(1, N)
    itemsize = x2d.dtype.itemsize
    work = 2 * (tm * tk + tk * tn + tn + tm * tn) * itemsize + tm * tn * 4
    return pl.pallas_call(
        _linear_kernel,
        out_shape=jax.ShapeDtypeStruct((M, N), x2d.dtype),
        grid_spec=pltpu.PrefetchScalarGridSpec(
            num_scalar_prefetch=0,
            grid=(M // tm, N // tn, K // tk),
            in_specs=[
                pl.BlockSpec((tm, tk), lambda i, j, k: (i, k)),
                pl.BlockSpec((tk, tn), lambda i, j, k: (k, j)),
                pl.BlockSpec((1, tn), lambda i, j, k: (0, j)),
            ],
            out_specs=pl.BlockSpec((tm, tn), lambda i, j, k: (i, j)),
            scratch_shapes=[pltpu.VMEM((tm, tn), jnp.float32)],
        ),
        compiler_params=_mosaic_params(("parallel", "parallel", "arbitrary"), work),
    )(x2d, w, b2d)


# ---------------------------------------------------------------------------
# Attention (returns att): grid over (batch, head-blocks); whole-T scores.
# Reads q/k/v directly out of the fused (B, T, 3, H, D) qkv activation.
# ---------------------------------------------------------------------------
def _make_attn_kernel(T, head_dim, heads_per_block, causal):
    scale = 1.0 / math.sqrt(head_dim)

    def body(q_ref, k_ref, v_ref, y_ref, att_ref, bias):
        # q_ref/k_ref/v_ref/y_ref: (T, hb, D); att_ref: (hb, T, T)
        if causal:
            row = lax.broadcasted_iota(jnp.int32, (T, T), 0)   # hoisted out of loop
            col = lax.broadcasted_iota(jnp.int32, (T, T), 1)
            keep = col <= row
        for i in range(heads_per_block):        # static; per-head (T,D) MXU matmuls
            q = q_ref[:, i, :] * scale          # fold 1/sqrt(D) into q (O(T*D))
            k = k_ref[:, i, :]
            v = v_ref[:, i, :]
            # q @ k^T without materializing a transpose (contract the D axis).
            s = lax.dot_general(q, k, (((1,), (1,)), ((), ())),
                                preferred_element_type=jnp.float32)
            if causal:
                s = jnp.where(keep, s, _NEG_BIG)
            else:
                s = s + bias                    # additive 0 / -1e30 mask
            s = s - jnp.max(s, axis=-1, keepdims=True)
            p = jnp.exp(s)
            # exact reciprocal: returned attention rows sum to 1
            att = p * (1.0 / jnp.sum(p, axis=-1, keepdims=True))
            att_ref[i] = att.astype(att_ref.dtype)
            y_ref[:, i, :] = jnp.dot(att.astype(v.dtype), v,
                                     preferred_element_type=jnp.float32
                                     ).astype(y_ref.dtype)

    if causal:
        def kernel(q_ref, k_ref, v_ref, y_ref, att_ref):
            body(q_ref, k_ref, v_ref, y_ref, att_ref, None)
    else:
        def kernel(q_ref, k_ref, v_ref, bias_ref, y_ref, att_ref):
            body(q_ref, k_ref, v_ref, y_ref, att_ref, bias_ref[...])
    return kernel


def causal_attention(qkv5, mask_bias, *, head_block=None):
    """qkv5: (B, T, 3, H, D) fused projection output.  mask_bias: None => generate
    the causal mask in-kernel; else a (1, 1, T, T) additive bias (0 / -1e30).
    Returns y: (B, T, H, D) and att: (B, H, T, T)."""
    B, T, _, H, D = qkv5.shape
    dtype = qkv5.dtype
    itemsize = jnp.dtype(dtype).itemsize
    causal = mask_bias is None

    per_head = (2 * (3 * T * D + T * T + T * D) * itemsize   # double-buffered blocks
                + 3 * T * T * 4)                              # f32 s/p/att temporaries
    hb = head_block or _pick_heads_per_block(H, per_head, _VMEM_BUDGET, B)
    nh = H // hb
    # TODO(synk): at large T this whole-row-softmax path (needed because att is a
    # module output) cannot fit VMEM; use return_att=False (flash path) instead.

    kernel = _make_attn_kernel(T, D, hb, causal)
    in_specs = [
        pl.BlockSpec((None, T, None, hb, D), lambda b, h: (b, 0, 0, h, 0)),  # q
        pl.BlockSpec((None, T, None, hb, D), lambda b, h: (b, 0, 1, h, 0)),  # k
        pl.BlockSpec((None, T, None, hb, D), lambda b, h: (b, 0, 2, h, 0)),  # v
    ]
    operands = [qkv5, qkv5, qkv5]
    work = hb * per_head
    if not causal:
        in_specs.append(pl.BlockSpec((None, None, T, T), lambda b, h: (0, 0, 0, 0)))
        operands.append(mask_bias)
        work += 2 * T * T * 4

    y4, att = pl.pallas_call(
        kernel,
        out_shape=(jax.ShapeDtypeStruct((B, T, H, D), dtype),
                   jax.ShapeDtypeStruct((B, H, T, T), dtype)),
        grid_spec=pltpu.PrefetchScalarGridSpec(
            num_scalar_prefetch=0,
            grid=(B, nh),
            in_specs=in_specs,
            out_specs=(
                pl.BlockSpec((None, T, hb, D), lambda b, h: (b, 0, h, 0)),
                pl.BlockSpec((None, hb, T, T), lambda b, h: (b, h, 0, 0)),
            ),
        ),
        compiler_params=_mosaic_params(("parallel", "parallel"), work),
    )(*operands)
    return y4, att


# ---------------------------------------------------------------------------
# Flash-style attention (no att output): KV grid axis, online softmax with
# f32 m/l/acc VMEM scratch, causal mask generated in-kernel, causal block skip.
# ---------------------------------------------------------------------------
def _make_flash_kernel(tq, tk, head_dim, heads_per_block):
    scale = 1.0 / math.sqrt(head_dim)

    def kernel(q_ref, k_ref, v_ref, y_ref, m_sc, l_sc, acc_sc):
        qi = pl.program_id(2)
        ki = pl.program_id(3)

        @pl.when(ki == 0)
        def _():
            m_sc[...] = jnp.full_like(m_sc, -jnp.inf)
            l_sc[...] = jnp.zeros_like(l_sc)
            acc_sc[...] = jnp.zeros_like(acc_sc)

        # KV blocks entirely above the causal diagonal contribute nothing: skip.
        @pl.when(ki * tk <= qi * tq + (tq - 1))
        def _():
            qpos = qi * tq + lax.broadcasted_iota(jnp.int32, (tq, tk), 0)
            kpos = ki * tk + lax.broadcasted_iota(jnp.int32, (tq, tk), 1)
            keep = kpos <= qpos
            for i in range(heads_per_block):
                q = q_ref[:, i, :] * scale
                k = k_ref[:, i, :]
                v = v_ref[:, i, :]
                s = lax.dot_general(q, k, (((1,), (1,)), ((), ())),
                                    preferred_element_type=jnp.float32)
                s = jnp.where(keep, s, _NEG_BIG)
                m_prev = m_sc[i]
                m_new = jnp.maximum(m_prev, jnp.max(s, axis=-1, keepdims=True))
                alpha = jnp.exp(m_prev - m_new)
                p = jnp.exp(s - m_new)
                l_sc[i] = alpha * l_sc[i] + jnp.sum(p, axis=-1, keepdims=True)
                acc_sc[i] = alpha * acc_sc[i] + jnp.dot(
                    p.astype(v.dtype), v, preferred_element_type=jnp.float32)
                m_sc[i] = m_new

        @pl.when(ki == pl.num_programs(3) - 1)
        def _():
            for i in range(heads_per_block):
                y_ref[:, i, :] = (acc_sc[i] * pl.reciprocal(l_sc[i], approx=True)
                                  ).astype(y_ref.dtype)

    return kernel


def flash_attention(qkv5, *, head_block=None, q_block_target=256,
                    kv_block_target=512):
    """Causal attention without materializing att.  qkv5: (B, T, 3, H, D).
    Returns y: (B, T, H, D)."""
    B, T, _, H, D = qkv5.shape
    dtype = qkv5.dtype
    itemsize = jnp.dtype(dtype).itemsize
    tq = _tile(T, q_block_target, 8)
    tk = _tile(T, kv_block_target, 8)
    per_head = (2 * (2 * tq * D + 2 * tk * D) * itemsize    # q/k/v/y blocks (x2 buf)
                + (tq * (D + 2)) * 4                         # m/l/acc scratch
                + 2 * tq * tk * 4)                           # f32 s/p temporaries
    hb = head_block or _pick_heads_per_block(H, per_head, _VMEM_BUDGET,
                                             B * (T // tq))
    nh = H // hb
    kernel = _make_flash_kernel(tq, tk, D, hb)
    y4 = pl.pallas_call(
        kernel,
        out_shape=jax.ShapeDtypeStruct((B, T, H, D), dtype),
        grid_spec=pltpu.PrefetchScalarGridSpec(
            num_scalar_prefetch=0,
            grid=(B, nh, T // tq, T // tk),
            in_specs=[
                pl.BlockSpec((None, tq, None, hb, D),
                             lambda b, h, qi, ki: (b, qi, 0, h, 0)),   # q
                pl.BlockSpec((None, tk, None, hb, D),
                             lambda b, h, qi, ki: (b, ki, 1, h, 0)),   # k
                pl.BlockSpec((None, tk, None, hb, D),
                             lambda b, h, qi, ki: (b, ki, 2, h, 0)),   # v
            ],
            out_specs=pl.BlockSpec((None, tq, hb, D),
                                   lambda b, h, qi, ki: (b, qi, h, 0)),
            scratch_shapes=[
                pltpu.VMEM((hb, tq, 1), jnp.float32),   # m
                pltpu.VMEM((hb, tq, 1), jnp.float32),   # l
                pltpu.VMEM((hb, tq, D), jnp.float32),   # acc
            ],
        ),
        compiler_params=_mosaic_params(
            ("parallel", "parallel", "parallel", "arbitrary"), hb * per_head),
    )(qkv5, qkv5, qkv5)
    return y4


# ---------------------------------------------------------------------------
# CausalSelfAttention forward (glue in plain JAX, hot paths in Pallas)
# ---------------------------------------------------------------------------
def causal_self_attention(x, attn_mask, params, n_head, *,
                          mask_is_causal=True, return_att=True,
                          head_block=None, q_block_target=256,
                          kv_block_target=512,
                          lin_tm=512, lin_tn=256, lin_tk=512):
    """Reproduces CausalSelfAttention.forward (dropout p=0 => identity).

    mask_is_causal=True: the causal mask is generated in-kernel (the module's
    registered `bias` buffer is exactly this tril mask), removing the (T,T)
    HBM read.  mask_is_causal=False applies the given attn_mask generically.
    return_att=False: skips materializing (B,H,T,T) att and uses the flash
    (KV-tiled) kernel; returns (y, None).
    """
    B, T, C = x.shape
    H = n_head
    D = C // H

    # fused qkv projection; (B*T, 3C) -> (B, T, 3, H, D) is a free reshape and the
    # per-head q/k/v views are carved out by the attention BlockSpecs.
    qkv = linear(x.reshape(B * T, C), params["w_attn"], params["b_attn"],
                 tm_target=lin_tm, tn_target=lin_tn, tk_target=lin_tk)
    qkv5 = qkv.reshape(B, T, 3, H, D)

    if return_att:
        mask_bias = None
        if not mask_is_causal:
            # tiny (1,1,T,T) wrapper-side op; finite -1e30 instead of -inf.
            # TODO(synk): a fully-masked (all-zero) mask row gives a uniform row
            # here instead of PyTorch's NaNs; never happens for causal masks.
            mask_bias = jnp.where(attn_mask == 0, jnp.float32(_NEG_BIG),
                                  jnp.float32(0.0))
        y4, att = causal_attention(qkv5, mask_bias, head_block=head_block)
    else:
        if not mask_is_causal:
            raise NotImplementedError("flash path supports the causal mask only")
        y4 = flash_attention(qkv5, head_block=head_block,
                             q_block_target=q_block_target,
                             kv_block_target=kv_block_target)
        att = None

    # merge heads: (B, T, H, D) -> (B, T, C) is a free reshape (head-major layout
    # was written by the kernel); output projection.
    y = linear(y4.reshape(B * T, C), params["w_proj"], params["b_proj"],
               tm_target=lin_tm, tn_target=lin_tn, tk_target=lin_tk)
    # TODO(synk): attn_dropout / resid_dropout are identity for dropout=0 (eval).
    return y.reshape(B, T, C), att


# ---------------------------------------------------------------------------
# Pure-JAX reference for correctness checks
# ---------------------------------------------------------------------------
def reference(x, attn_mask, params, n_head):
    B, T, C = x.shape
    D = C // n_head
    qkv = x @ params["w_attn"] + params["b_attn"]
    q, k, v = jnp.split(qkv, 3, axis=2)
    q = q.reshape(B, T, n_head, D).transpose(0, 2, 1, 3)
    k = k.reshape(B, T, n_head, D).transpose(0, 2, 1, 3)
    v = v.reshape(B, T, n_head, D).transpose(0, 2, 1, 3)
    s = (q @ jnp.swapaxes(k, -2, -1)) * (1.0 / math.sqrt(D))
    s = jnp.where(attn_mask == 0, -jnp.inf, s)
    att = jax.nn.softmax(s, axis=-1)
    y = att @ v
    y = y.transpose(0, 2, 1, 3).reshape(B, T, C)
    y = y @ params["w_proj"] + params["b_proj"]
    return y, att


def _run_case(name, B, T, C, n_head, **kw):
    key = jax.random.PRNGKey(0)
    kx, kw1, kb1, kw2, kb2 = jax.random.split(key, 5)
    x = jax.random.normal(kx, (B, T, C), dtype=jnp.float32)
    params = {
        "w_attn": jax.random.normal(kw1, (C, 3 * C), dtype=jnp.float32) * 0.02,
        "b_attn": jax.random.normal(kb1, (3 * C,), dtype=jnp.float32) * 0.02,
        "w_proj": jax.random.normal(kw2, (C, C), dtype=jnp.float32) * 0.02,
        "b_proj": jax.random.normal(kb2, (C,), dtype=jnp.float32) * 0.02,
    }
    # the module's registered `bias` buffer: (1, 1, T, T) tril of ones
    attn_mask = jnp.tril(jnp.ones((T, T), dtype=jnp.float32)).reshape(1, 1, T, T)

    y_ref, att_ref = reference(x, attn_mask, params, n_head)

    # 1) primary path: causal mask generated in-kernel, att returned (module output)
    y, att = causal_self_attention(x, attn_mask, params, n_head,
                                   mask_is_causal=True, **kw)
    jax.block_until_ready((y, att))
    assert y.shape == (B, T, C) and att.shape == (B, n_head, T, T)
    assert jnp.allclose(y, y_ref, atol=2e-3, rtol=2e-3), (
        name, float(jnp.max(jnp.abs(y - y_ref))))
    assert jnp.allclose(att, att_ref, atol=2e-3, rtol=2e-3), (
        name, float(jnp.max(jnp.abs(att - att_ref))))

    # 2) general path: user-supplied attn_mask applied as an additive bias input
    y2, att2 = causal_self_attention(x, attn_mask, params, n_head,
                                     mask_is_causal=False, **kw)
    jax.block_until_ready((y2, att2))
    assert jnp.allclose(y2, y_ref, atol=2e-3, rtol=2e-3), (
        name, float(jnp.max(jnp.abs(y2 - y_ref))))
    assert jnp.allclose(att2, att_ref, atol=2e-3, rtol=2e-3), name

    # 3) flash path (no att materialization): y only
    y3, att3 = causal_self_attention(x, attn_mask, params, n_head,
                                     mask_is_causal=True, return_att=False, **kw)
    jax.block_until_ready(y3)
    assert att3 is None
    assert jnp.allclose(y3, y_ref, atol=2e-3, rtol=2e-3), (
        name, float(jnp.max(jnp.abs(y3 - y_ref))))


if __name__ == "__main__":
    # tiny config: single-block grids everywhere
    _run_case("tiny", B=2, T=8, C=32, n_head=4)
    # config that exercises multi-block grids: linear M/N/K tiling + K-axis
    # accumulation, multiple attention head blocks, and multiple flash q/kv blocks
    # (online softmax across kv + causal block skip).
    _run_case("tiled", B=2, T=64, C=256, n_head=16,
              head_block=8, q_block_target=32, kv_block_target=32,
              lin_tm=64, lin_tn=128, lin_tk=128)
    print("KERNEL_OK")
</pallas_src>

<mosaic_0001>
module attributes {stable_mosaic.version = 11 : i64} {
  func.func @_linear_kernel(%arg0: i32, %arg1: i32, %arg2: i32, %arg3: memref<16x32xf32, #tpu.memory_space<vmem>>, %arg4: memref<32x96xf32, #tpu.memory_space<vmem>>, %arg5: memref<1x96xf32, #tpu.memory_space<vmem>>, %arg6: memref<16x96xf32, #tpu.memory_space<vmem>>, %arg7: memref<16x96xf32, #tpu.memory_space<vmem>>) attributes {dimension_semantics = [#tpu.dimension_semantics<parallel>, #tpu.dimension_semantics<parallel>, #tpu.dimension_semantics<arbitrary>], iteration_bounds = array<i64: 1, 1, 1>, scalar_prefetch = 0 : i64, scratch_operands = 1 : i64, tpu.core_type = #tpu.core_type<tc>, window_params = [{transform_indices = @transform_0, window_bounds = array<i64: 16, 32>}, {transform_indices = @transform_1, window_bounds = array<i64: 32, 96>}, {transform_indices = @transform_2, window_bounds = array<i64: 1, 96>}, {transform_indices = @transform_3, window_bounds = array<i64: 16, 96>}]} {
    %c0_i32 = arith.constant 0 : i32
    %0 = arith.cmpi eq, %arg2, %c0_i32 : i32
    %1 = arith.extui %0 : i1 to i32
    %c0_i32_0 = arith.constant 0 : i32
    %2 = arith.cmpi ne, %1, %c0_i32_0 : i32
    scf.if %2 {
      %cst_10 = arith.constant 0.000000e+00 : f32
      %12 = vector.broadcast %cst_10 : f32 to vector<16x96xf32>
      %c0_11 = arith.constant 0 : index
      %c0_12 = arith.constant 0 : index
      %13 = vector.load %arg7[%c0_11, %c0_12] : memref<16x96xf32, #tpu.memory_space<vmem>>, vector<16x96xf32>
      tpu.vector_store %arg7[%c0_11, %c0_12], %12 {strides = array<i32>} : memref<16x96xf32, #tpu.memory_space<vmem>>, vector<16x96xf32>,
    } else {
    }
    %c0 = arith.constant 0 : index
    %c0_1 = arith.constant 0 : index
    %3 = vector.load %arg7[%c0, %c0_1] : memref<16x96xf32, #tpu.memory_space<vmem>>, vector<16x96xf32>
    %c0_2 = arith.constant 0 : index
    %c0_3 = arith.constant 0 : index
    %4 = vector.load %arg3[%c0_2, %c0_3] : memref<16x32xf32, #tpu.memory_space<vmem>>, vector<16x32xf32>
    %c0_4 = arith.constant 0 : index
    %c0_5 = arith.constant 0 : index
    %5 = vector.load %arg4[%c0_4, %c0_5] : memref<32x96xf32, #tpu.memory_space<vmem>>, vector<32x96xf32>
    %cst = arith.constant dense<0.000000e+00> : vector<16x96xf32>
    %6 = tpu.matmul %4, %5, %cst {dimension_numbers = #tpu.dot_dimension_numbers<[1], [0], [0], [1], [0, 0, 1, 1], [], []>} : vector<16x32xf32>, vector<32x96xf32>, vector<16x96xf32> -> vector<16x96xf32>
    %7 = arith.addf %3, %6 : vector<16x96xf32>
    %c0_6 = arith.constant 0 : index
    %c0_7 = arith.constant 0 : index
    %8 = vector.load %arg7[%c0_6, %c0_7] : memref<16x96xf32, #tpu.memory_space<vmem>>, vector<16x96xf32>
    tpu.vector_store %arg7[%c0_6, %c0_7], %7 {strides = array<i32>} : memref<16x96xf32, #tpu.memory_space<vmem>>, vector<16x96xf32>,
    %c0_i32_8 = arith.constant 0 : i32
    %9 = arith.cmpi eq, %arg2, %c0_i32_8 : i32
    %10 = arith.extui %9 : i1 to i32
    %c0_i32_9 = arith.constant 0 : i32
    %11 = arith.cmpi ne, %10, %c0_i32_9 : i32
    scf.if %11 {
      %c0_10 = arith.constant 0 : index
      %c0_11 = arith.constant 0 : index
      %12 = vector.load %arg7[%c0_10, %c0_11] : memref<16x96xf32, #tpu.memory_space<vmem>>, vector<16x96xf32>
      %c0_12 = arith.constant 0 : index
      %c0_13 = arith.constant 0 : index
      %13 = vector.load %arg5[%c0_12, %c0_13] : memref<1x96xf32, #tpu.memory_space<vmem>>, vector<1x96xf32>
      %14 = vector.broadcast %13 : vector<1x96xf32> to vector<16x96xf32>
      %15 = arith.addf %12, %14 : vector<16x96xf32>
      %c0_14 = arith.constant 0 : index
      %c0_15 = arith.constant 0 : index
      %16 = vector.load %arg6[%c0_14, %c0_15] : memref<16x96xf32, #tpu.memory_space<vmem>>, vector<16x96xf32>
      tpu.vector_store %arg6[%c0_14, %c0_15], %15 {strides = array<i32>} : memref<16x96xf32, #tpu.memory_space<vmem>>, vector<16x96xf32>,
    } else {
    }
    return
  }
  func.func @transform_0(%arg0: i32, %arg1: i32, %arg2: i32) -> (i32, i32) {
    %c0_i32 = arith.constant 0 : i32
    return %arg0, %arg2 : i32, i32
  }
  func.func @transform_1(%arg0: i32, %arg1: i32, %arg2: i32) -> (i32, i32) {
    %c0_i32 = arith.constant 0 : i32
    return %arg2, %arg1 : i32, i32
  }
  func.func @transform_2(%arg0: i32, %arg1: i32, %arg2: i32) -> (i32, i32) {
    %c0_i32 = arith.constant 0 : i32
    %c0_i32_0 = arith.constant 0 : i32
    return %c0_i32, %arg1 : i32, i32
  }
  func.func @transform_3(%arg0: i32, %arg1: i32, %arg2: i32) -> (i32, i32) {
    %c0_i32 = arith.constant 0 : i32
    return %arg0, %arg1 : i32, i32
  }
}

</mosaic_0001>

<bundles_post_ra>
// kernel: tpu_custom_call.1
= control target key start
LH: loop header
LB: loop body
LE: loop exit
PB: predicated region body
PF: predicated region fallthrough
CT: control target
= control target key end

     0   :  { %8 = vsyncpa [#allocation4], 0  ;;  %s326_s0 = inlined_call_operand.hbm [shape: f32[16,32], index: 0, kind: input, shape index: {}]   ;;  %s327_s1 = inlined_call_operand.hbm [shape: f32[32,96], index: 1, kind: input, shape index: {}]   ;;  %s328_s2 = inlined_call_operand.vmem [shape: f32[1,96], index: 2, kind: input, shape index: {}]   ;;  %s329_s3 = inlined_call_operand.hbm [shape: f32[16,96], index: 3, kind: output, shape index: {}]  }
   0x1   :  { %9 = vsyncpa [#allocation7], 0 }
   0x2   :  { %10 = vsyncpa [#allocation5], 0  ;;  %s271_s12 = smov [#allocation3]  }
   0x3   :  { %s16_s13 = sshll.u32 %s271_s12, 4  ;;  %s17_s13 = int_to_ptr.vmem [resolvable:$true] %s16_s13 }
   0x4   :  { %s213_s14 = scalar_lea.vmem %s17_s13, 256  ;;  %p218_p1 = scmp.lt.s32.totalorder %s17_s13, %s17_s13 }
   0x5   :  { %p214_p0 = scmp.ne.s32.totalorder %s17_s13, %s213_s14  ;;  %p219_p2 = scmp.lt.s32.totalorder %s213_s14, %s213_s14 }
   0x7   :  { %p220_p3 = por %p219_p2, %p218_p1 }
   0x9   :  { %p221_p4 = pnand %p220_p3, %p214_p0 }
   0xb   :  { %224 = shalt.err (!%p221_p4)
}
   0xc   :  { %s272_s15 = smov 128   ;;  %s273_s16 = smov 8  }
   0xd   :  { %22 = dma.hbm_to_vmem [thread:$0]  %s326_s0, 256, %s17_s13, [#allocation4], %s272_s15, %s272_s15, %s273_s16  }
   0xe   :  { %s274_s19 = smov [#allocation6]  }
   0xf   :  { %s28_s20 = sshll.u32 %s274_s19, 4  ;;  %s29_s20 = int_to_ptr.vmem [resolvable:$true] %s28_s20 }
  0x10   :  { %s233_s21 = scalar_lea.vmem %s29_s20, 512  ;;  %p238_p6 = scmp.lt.s32.totalorder %s29_s20, %s29_s20 }
  0x11   :  { %p234_p5 = scmp.ne.s32.totalorder %s29_s20, %s233_s21  ;;  %p239_p7 = scmp.lt.s32.totalorder %s233_s21, %s233_s21 }
  0x13   :  { %p240_p8 = por %p239_p7, %p238_p6 }
  0x15   :  { %p241_p9 = pnand %p240_p8, %p234_p5 }
  0x17   :  { %244 = shalt.err (!%p241_p9)
}
  0x18   :  { %34 = dma.hbm_to_vmem [thread:$0]  %s327_s1, 512, %s29_s20, [#allocation7], %s272_s15, %s272_s15, %s273_s16  }
  0x19   :  { %265 = dma.done.wait [#allocation4], 256  }
  0x1a   :  { %266 = vsyncadd [#allocation4], 4294967040 }
  0x1b   :  { %267 = dma.done.wait [#allocation7], 512  }
  0x1c   :  { %268 = vsyncadd [#allocation7], 4294966784  ;;  %vm47_vm0 = vcmask 785408   ;;  %v275_v0 = vmov 0.0   ;;  %vm58_vm1 = vcmask 261120   ;;  %v57_v1 = vld [vmem:[#allocation6 + $0x18] sm:$0xff] }
  0x1d   :  { %49 = vst.msk [vmem:[#allocation2 + $0x8] sm:$0xff] %vm47_vm0, %v275_v0  ;;  %48 = vst.msk [vmem:[#allocation2] sm:$0xff] %vm47_vm0, %v275_v0  ;;  %v56_v2 = vld [vmem:[#allocation6 + $0x10] sm:$0xff]  ;;  %188 = vmatprep.subr.mxu0 %v57_v1  ;;  %v55_v4 = vld [vmem:[#allocation6 + $0x8] sm:$0xff]  ;;  %s276_s24 = smov [#allocation8]  }
  0x1e   :  { %v52_v3 = vld [vmem:[#allocation3] sm:$0xff]  ;;  %189 = vmatpush3.msra.mxu0 %v57_v1  ;;  %v54_v5 = vld [vmem:[#allocation6] sm:$0xff]  ;;  %v53_v6 = vld [vmem:[#allocation3 + $0x8] sm:$0xff]  ;;  %s166_s25 = sshll.u32 %s276_s24, 4  ;;  %s167_s25 = int_to_ptr.vmem [resolvable:$true] %s166_s25 }
  0x1f   :  { %196 = vmatprep.mubr.msk.f32.mxu0 %vm58_vm1, %v52_v3  ;;  %190 = vmatprep.subr.mxu0 %v56_v2  ;;  %v181_v13 = vld [vmem:[%s328_s2] ss:$0 sm:$0xff]  ;;  %s245_s26 = scalar_lea.vmem %s167_s25, 256  ;;  %p250_p11 = scmp.lt.s32.totalorder %s167_s25, %s167_s25 }
  0x20   :  { %191 = vmatpush3.msra.mxu0 %v56_v2  ;;  %p246_p10 = scmp.ne.s32.totalorder %s167_s25, %s245_s26  ;;  %p251_p12 = scmp.lt.s32.totalorder %s245_s26, %s245_s26 }
  0x21   :  { %192 = vmatprep.subr.mxu0 %v55_v4 }
  0x22   :  { %193 = vmatpush3.msra.mxu0 %v55_v4  ;;  %p252_p13 = por %p251_p12, %p250_p11 }
  0x23   :  { %194 = vmatprep.subr.mxu0 %v54_v5 }
  0x24   :  { %195 = vmatpush3.msra.mxu0 %v54_v5  ;;  %v51_v7 = vld [vmem:[#allocation2 + $0x8] sm:$0xff]  ;;  %v50_v9 = vld [vmem:[#allocation2] sm:$0xff]  ;;  %p253_p0 = pnand %p252_p13, %p246_p10 }
  0x25   :  { %197 = vmatmul.mubr.msk.f32.vlgmr.msra.gmra.mxu0 %vm58_vm1, %v53_v6 }
  0xe5   :  { %v198_v8 = vpop.f32.mrf.mxu0 }
  0xe6   :  { %v141_v10 = vadd.f32 %v198_v8, %v51_v7 }
  0xe7   :  { %v131_v11 = vpop.f32.mrf.mxu0 }
  0xe8   :  { %144 = vst.msk [vmem:[#allocation2 + $0x8] sm:$0xff] %vm47_vm0, %v141_v10  ;;  %v140_v12 = vadd.f32 %v131_v11, %v50_v9 }
  0xea   :  { %143 = vst.msk [vmem:[#allocation2] sm:$0xff] %vm47_vm0, %v140_v12 }
  0xef   :  { %v149_v14 = vld [vmem:[#allocation2 + $0x8] sm:$0xff] }
  0xf0   :  { %v158_v15 = vadd.f32 %v181_v13, %v149_v14 }
  0xf1   :  { %v148_v16 = vld [vmem:[#allocation2] sm:$0xff] }
  0xf2   :  { %v157_v17 = vadd.f32 %v181_v13, %v148_v16  ;;  %160 = vst.msk [vmem:[#allocation8 + $0x8] sm:$0xff] %vm47_vm0, %v158_v15 }
  0xf4   :  { %159 = vst.msk [vmem:[#allocation8] sm:$0xff] %vm47_vm0, %v157_v17 }
  0xf5   :  { %256 = shalt.err (!%p253_p0)
}
  0xf6   :  { %172 = dma.vmem_to_hbm [thread:$0]  %s167_s25, 256, %s329_s3, [#allocation5], %s272_s15, %s272_s15, %s273_s16  }
  0xf7   :  { %269 = dma.done.wait [#allocation5], 256  }
  0xf8   :  { %270 = vsyncadd [#allocation5], 4294967040 }
  0xf9   :  { %176 = vsyncpa [#allocation4], 1 }
  0xfa   :  { %177 = vsyncpa [#allocation7], 1 }
  0xfb   :  { %178 = vsyncpa [#allocation5], 1 }

</bundles_post_ra>
